<compile_context>
chip_gen: v5e
topology: v5e:2x2
jax: 0.10.0
libtpu: 0.0.40
codegen_flags: <defaults>
</compile_context>

<pallas_src>
import math
import jax
import jax.numpy as jnp
from jax.experimental import pallas as pl
from jax.experimental.pallas import tpu as pltpu

MAX_TILE_B = 1024   # cap on batch rows per grid step (sweep 512-2048 for huge B)
MIN_TILE_B = 8      # f32 sublane granularity


def _choose_tile_b(batch):
    """Batch tile: multiple of 8, <= MAX_TILE_B, and >= 2 grid steps whenever the
    batch allows it (so v7x megacore sharding has work for both TensorCores)."""
    if batch <= MIN_TILE_B:
        return MIN_TILE_B
    tile = pl.next_power_of_2(pl.cdiv(batch, 2))   # ~half the batch -> >= 2 tiles
    return int(max(MIN_TILE_B, min(MAX_TILE_B, tile)))


def critic_kernel(x_ref, w1_ref, b1_ref, w2_ref, b2_ref, w3_ref, b3_ref, o_ref):
    # Cast the f32 state tile to bf16 on the VPU (tile already in VMEM) — avoids a
    # separate wrapper-side cast pass over x in HBM.
    x = x_ref[...].astype(jnp.bfloat16)
    # Layer 1 (MXU): (tile_b, S)bf16 @ (S, 128)bf16 -> f32 acc; bias+ReLU on VPU.
    h1 = jnp.dot(x, w1_ref[...], preferred_element_type=jnp.float32)
    h1 = jnp.maximum(h1 + b1_ref[...], 0.0)
    # Layer 2 (MXU): (tile_b, 128)bf16 @ (128, 256)bf16 -> f32 acc; bias+ReLU.
    h2 = jnp.dot(h1.astype(jnp.bfloat16), w2_ref[...],
                 preferred_element_type=jnp.float32)
    h2 = jnp.maximum(h2 + b2_ref[...], 0.0)
    # Value head (out_features == 1): VPU multiply + XLU lane reduce instead of an
    # N=1 MXU matmul.  Sublane-major (tile_b, 1) store — output is 4 B/row, so the
    # masked partial store is cheap and no lane relayout is needed.
    v = jnp.sum(h2 * w3_ref[...], axis=-1, keepdims=True) + b3_ref[0, 0]
    o_ref[...] = v.astype(o_ref.dtype)


def prepare_critic_params(params):
    """One-time parameter layout prep (hoisted out of the per-call path):
    bf16 weights for the MXU path, f32 biases, (1, 256) f32 value row for the VPU
    head, and a (1, 1) f32 scalar for SMEM."""
    w1, b1, w2, b2, w3, b3 = params
    return (w1.astype(jnp.bfloat16), b1.astype(jnp.float32),
            w2.astype(jnp.bfloat16), b2.astype(jnp.float32),
            w3.reshape(1, -1).astype(jnp.float32),
            b3.reshape(1, 1).astype(jnp.float32))


def critic_forward(state, prepared_params, *, tile_b=None):
    """Fused forward pass of the Critic MLP as one batch-tiled Pallas call."""
    w1b, b1, w2b, b2, w3row, b3s = prepared_params
    B, S = state.shape
    if tile_b is None:
        tile_b = _choose_tile_b(B)
    assert tile_b % MIN_TILE_B == 0, "tile_b must be a multiple of 8 (f32 sublanes)"
    num_tiles = pl.cdiv(B, tile_b)

    const = lambda shape: pl.BlockSpec(shape, lambda i, _s=shape: (0,) * len(_s))

    return pl.pallas_call(
        critic_kernel,
        out_shape=jax.ShapeDtypeStruct((B, 1), jnp.float32),
        grid=(num_tiles,),
        in_specs=[
            # Streamed f32 batch tile; ragged final tile handled by Pallas block
            # padding (no host-side jnp.pad pass over x).
            # TODO(synk): on v5e, sweep pipeline_mode=pl.Buffered(3) here if a
            # trace shows exposed DMA on the x stream.
            pl.BlockSpec((tile_b, S), lambda i: (i, 0)),
            const(w1b.shape), const(b1.shape),     # VMEM-resident across tiles
            const(w2b.shape), const(b2.shape),
            const(w3row.shape),
            pl.BlockSpec(memory_space=pltpu.MemorySpace.SMEM),   # b3 scalar
        ],
        out_specs=pl.BlockSpec((tile_b, 1), lambda i: (i, 0)),
        compiler_params=pltpu.CompilerParams(
            dimension_semantics=("parallel",),     # megacore sharding on v7x
        ),
    )(state, w1b, b1, w2b, b2, w3row, b3s)


def init_critic_params(key, state_size):
    """Deterministic init mimicking nn.Linear's U(-1/sqrt(fan_in), 1/sqrt(fan_in)).
    Weights stored as (in_features, out_features)."""
    dims = [(state_size, 128), (128, 256), (256, 1)]
    params = []
    for i, (fan_in, fan_out) in enumerate(dims):
        kw, kb = jax.random.split(jax.random.fold_in(key, i))
        bound = 1.0 / math.sqrt(fan_in)
        w = jax.random.uniform(kw, (fan_in, fan_out), jnp.float32, -bound, bound)
        b = jax.random.uniform(kb, (1, fan_out), jnp.float32, -bound, bound)
        params += [w, b]
    return tuple(params)


def critic_ref(state, params):
    """Pure-JAX reference with the kernel's exact numerical recipe
    (bf16 matmul inputs, f32 accumulation, f32 bias/ReLU, f32 value head)."""
    w1, b1, w2, b2, w3, b3 = params
    h = jnp.dot(state.astype(jnp.bfloat16), w1.astype(jnp.bfloat16),
                preferred_element_type=jnp.float32)
    h = jnp.maximum(h + b1, 0.0)
    h = jnp.dot(h.astype(jnp.bfloat16), w2.astype(jnp.bfloat16),
                preferred_element_type=jnp.float32)
    h = jnp.maximum(h + b2, 0.0)
    return jnp.sum(h * w3.reshape(1, -1), axis=-1, keepdims=True) + b3


if __name__ == "__main__":
    key = jax.random.PRNGKey(0)
    batch, state_size, action_size = 8, 32, 4   # action_size unused in forward()

    k_params, k_state = jax.random.split(key)
    params = init_critic_params(k_params, state_size)
    prepared = prepare_critic_params(params)     # one-time layout prep
    state = jax.random.normal(k_state, (batch, state_size), jnp.float32)

    value = critic_forward(state, prepared)
    jax.block_until_ready(value)

    ref = critic_ref(state, params)
    assert value.shape == (batch, 1)
    assert jnp.allclose(value, ref, atol=1e-3, rtol=1e-3), \
        float(jnp.max(jnp.abs(value - ref)))

    print("KERNEL_OK")
</pallas_src>

<mosaic_0001>
module attributes {stable_mosaic.version = 11 : i64} {
  func.func @critic_kernel(%arg0: i32, %arg1: memref<8x32xf32, #tpu.memory_space<vmem>>, %arg2: memref<32x128xbf16, #tpu.memory_space<vmem>>, %arg3: memref<1x128xf32, #tpu.memory_space<vmem>>, %arg4: memref<128x256xbf16, #tpu.memory_space<vmem>>, %arg5: memref<1x256xf32, #tpu.memory_space<vmem>>, %arg6: memref<1x256xf32, #tpu.memory_space<vmem>>, %arg7: memref<1x1xf32, #tpu.memory_space<smem>>, %arg8: memref<8x1xf32, #tpu.memory_space<vmem>>) attributes {dimension_semantics = [#tpu.dimension_semantics<parallel>], iteration_bounds = array<i64: 1>, scalar_prefetch = 0 : i64, scratch_operands = 0 : i64, tpu.core_type = #tpu.core_type<tc>, window_params = [{transform_indices = @transform_0, window_bounds = array<i64: 8, 32>}, {pipeline_mode = #tpu.pipeline_mode<synchronous>, transform_indices = @transform_1, window_bounds = array<i64: 32, 128>}, {pipeline_mode = #tpu.pipeline_mode<synchronous>, transform_indices = @transform_2, window_bounds = array<i64: 1, 128>}, {pipeline_mode = #tpu.pipeline_mode<synchronous>, transform_indices = @transform_3, window_bounds = array<i64: 128, 256>}, {pipeline_mode = #tpu.pipeline_mode<synchronous>, transform_indices = @transform_4, window_bounds = array<i64: 1, 256>}, {pipeline_mode = #tpu.pipeline_mode<synchronous>, transform_indices = @transform_5, window_bounds = array<i64: 1, 256>}, {transform_indices = @transform_6, window_bounds = array<i64: 1, 1>}, {transform_indices = @transform_7, window_bounds = array<i64: 8, 1>}]} {
    %c0 = arith.constant 0 : index
    %c0_0 = arith.constant 0 : index
    %0 = vector.load %arg1[%c0, %c0_0] : memref<8x32xf32, #tpu.memory_space<vmem>>, vector<8x32xf32>
    %1 = arith.truncf %0 : vector<8x32xf32> to vector<8x32xbf16>
    %c0_1 = arith.constant 0 : index
    %c0_2 = arith.constant 0 : index
    %2 = vector.load %arg2[%c0_1, %c0_2] : memref<32x128xbf16, #tpu.memory_space<vmem>>, vector<32x128xbf16>
    %cst = arith.constant dense<0.000000e+00> : vector<8x128xf32>
    %3 = tpu.matmul %1, %2, %cst {dimension_numbers = #tpu.dot_dimension_numbers<[1], [0], [0], [1], [0, 0, 1, 1], [], []>} : vector<8x32xbf16>, vector<32x128xbf16>, vector<8x128xf32> -> vector<8x128xf32>
    %c0_3 = arith.constant 0 : index
    %c0_4 = arith.constant 0 : index
    %4 = vector.load %arg3[%c0_3, %c0_4] : memref<1x128xf32, #tpu.memory_space<vmem>>, vector<1x128xf32>
    %5 = vector.broadcast %4 : vector<1x128xf32> to vector<8x128xf32>
    %6 = arith.addf %3, %5 : vector<8x128xf32>
    %cst_5 = arith.constant 0.000000e+00 : f32
    %7 = vector.broadcast %cst_5 : f32 to vector<8x128xf32>
    %8 = arith.maximumf %6, %7 : vector<8x128xf32>
    %9 = arith.truncf %8 : vector<8x128xf32> to vector<8x128xbf16>
    %c0_6 = arith.constant 0 : index
    %c0_7 = arith.constant 0 : index
    %10 = vector.load %arg4[%c0_6, %c0_7] : memref<128x256xbf16, #tpu.memory_space<vmem>>, vector<128x256xbf16>
    %cst_8 = arith.constant dense<0.000000e+00> : vector<8x256xf32>
    %11 = tpu.matmul %9, %10, %cst_8 {dimension_numbers = #tpu.dot_dimension_numbers<[1], [0], [0], [1], [0, 0, 1, 1], [], []>} : vector<8x128xbf16>, vector<128x256xbf16>, vector<8x256xf32> -> vector<8x256xf32>
    %c0_9 = arith.constant 0 : index
    %c0_10 = arith.constant 0 : index
    %12 = vector.load %arg5[%c0_9, %c0_10] : memref<1x256xf32, #tpu.memory_space<vmem>>, vector<1x256xf32>
    %13 = vector.broadcast %12 : vector<1x256xf32> to vector<8x256xf32>
    %14 = arith.addf %11, %13 : vector<8x256xf32>
    %cst_11 = arith.constant 0.000000e+00 : f32
    %15 = vector.broadcast %cst_11 : f32 to vector<8x256xf32>
    %16 = arith.maximumf %14, %15 : vector<8x256xf32>
    %c0_12 = arith.constant 0 : index
    %c0_13 = arith.constant 0 : index
    %17 = vector.load %arg6[%c0_12, %c0_13] : memref<1x256xf32, #tpu.memory_space<vmem>>, vector<1x256xf32>
    %18 = vector.broadcast %17 : vector<1x256xf32> to vector<8x256xf32>
    %19 = arith.mulf %16, %18 : vector<8x256xf32>
    %cst_14 = arith.constant dense<0.000000e+00> : vector<8xf32>
    %20 = vector.multi_reduction <add>, %19, %cst_14 [1] : vector<8x256xf32> to vector<8xf32>
    %21 = vector.shape_cast %20 : vector<8xf32> to vector<8x1xf32>
    %c0_15 = arith.constant 0 : index
    %c0_16 = arith.constant 0 : index
    %22 = memref.load %arg7[%c0_15, %c0_16] : memref<1x1xf32, #tpu.memory_space<smem>>
    %23 = vector.broadcast %22 : f32 to vector<8x1xf32>
    %24 = arith.addf %21, %23 : vector<8x1xf32>
    %c0_17 = arith.constant 0 : index
    %c0_18 = arith.constant 0 : index
    %25 = vector.load %arg8[%c0_17, %c0_18] : memref<8x1xf32, #tpu.memory_space<vmem>>, vector<8x1xf32>
    tpu.vector_store %arg8[%c0_17, %c0_18], %24 {strides = array<i32>} : memref<8x1xf32, #tpu.memory_space<vmem>>, vector<8x1xf32>,
    return
  }
  func.func @transform_0(%arg0: i32) -> (i32, i32) {
    %c0_i32 = arith.constant 0 : i32
    %c0_i32_0 = arith.constant 0 : i32
    return %arg0, %c0_i32 : i32, i32
  }
  func.func @transform_1(%arg0: i32) -> (i32, i32) {
    %c0_i32 = arith.constant 0 : i32
    %c0_i32_0 = arith.constant 0 : i32
    %c0_i32_1 = arith.constant 0 : i32
    return %c0_i32, %c0_i32_0 : i32, i32
  }
  func.func @transform_2(%arg0: i32) -> (i32, i32) {
    %c0_i32 = arith.constant 0 : i32
    %c0_i32_0 = arith.constant 0 : i32
    %c0_i32_1 = arith.constant 0 : i32
    return %c0_i32, %c0_i32_0 : i32, i32
  }
  func.func @transform_3(%arg0: i32) -> (i32, i32) {
    %c0_i32 = arith.constant 0 : i32
    %c0_i32_0 = arith.constant 0 : i32
    %c0_i32_1 = arith.constant 0 : i32
    return %c0_i32, %c0_i32_0 : i32, i32
  }
  func.func @transform_4(%arg0: i32) -> (i32, i32) {
    %c0_i32 = arith.constant 0 : i32
    %c0_i32_0 = arith.constant 0 : i32
    %c0_i32_1 = arith.constant 0 : i32
    return %c0_i32, %c0_i32_0 : i32, i32
  }
  func.func @transform_5(%arg0: i32) -> (i32, i32) {
    %c0_i32 = arith.constant 0 : i32
    %c0_i32_0 = arith.constant 0 : i32
    %c0_i32_1 = arith.constant 0 : i32
    return %c0_i32, %c0_i32_0 : i32, i32
  }
  func.func @transform_6(%arg0: i32) -> (i32, i32) {
    %c0_i32 = arith.constant 0 : i32
    %c0_i32_0 = arith.constant 0 : i32
    %c0_i32_1 = arith.constant 0 : i32
    return %c0_i32, %c0_i32_0 : i32, i32
  }
  func.func @transform_7(%arg0: i32) -> (i32, i32) {
    %c0_i32 = arith.constant 0 : i32
    %c0_i32_0 = arith.constant 0 : i32
    return %arg0, %c0_i32 : i32, i32
  }
}

</mosaic_0001>

<bundles_post_ra>
// kernel: tpu_custom_call.1
= control target key start
LH: loop header
LB: loop body
LE: loop exit
PB: predicated region body
PF: predicated region fallthrough
CT: control target
= control target key end

     0   :  { %13 = vsyncpa [#allocation4], 0  ;;  %s555_s0 = inlined_call_operand.hbm [shape: f32[8,32], index: 0, kind: input, shape index: {}]   ;;  %s556_s1 = inlined_call_operand.hbm [shape: bf16[32,128], index: 1, kind: input, shape index: {}]   ;;  %s557_s2 = inlined_call_operand.hbm [shape: f32[1,128], index: 2, kind: input, shape index: {}]   ;;  %s558_s3 = inlined_call_operand.hbm [shape: bf16[128,256], index: 3, kind: input, shape index: {}]   ;;  %s559_s4 = inlined_call_operand.vmem [shape: f32[1,256], index: 4, kind: input, shape index: {}]   ;;  %s560_s5 = inlined_call_operand.vmem [shape: f32[1,256], index: 5, kind: input, shape index: {}]   ;;  %s561_s6 = inlined_call_operand.<no memory space> [shape: f32[1,1], index: 6, kind: input, shape index: {}]   ;;  %s562_s7 = inlined_call_operand.vmem [shape: f32[8,1], index: 7, kind: output, shape index: {}]  }
   0x1   :  { %14 = vsyncpa [#allocation6], 0  ;;  %s31_s26 = sshll.u32 %s556_s1, 4  ;;  %s32_s26 = int_to_ptr.hbm [resolvable:$true] %s31_s26 }
   0x2   :  { %15 = vsyncpa [#allocation9], 0  ;;  %s483_s27 = smov [#allocation5]   ;;  %s21_s8 = sshll.u32 %s555_s0, 4  ;;  %s22_s8 = int_to_ptr.hbm [resolvable:$true] %s21_s8 }
   0x3   :  { %s33_s28 = sshll.u32 %s483_s27, 4  ;;  %s484_s9 = smov 64   ;;  %s34_s28 = int_to_ptr.vmem [resolvable:$true] %s33_s28 }
   0x4   :  { %s485_s10 = smov 4   ;;  %s486_s11 = smov [#allocation3]  }
   0x5   :  { %39 = dma.hbm_to_vmem [thread:$0]  %s32_s26, 256, %s34_s28, [#allocation6], %s484_s9, %s484_s9, %s485_s10  }
   0x6   :  { %s23_s12 = sshll.u32 %s486_s11, 4  ;;  %s45_s15 = sshll.u32 %s557_s2, 4  ;;  %s24_s12 = int_to_ptr.vmem [resolvable:$true] %s23_s12  ;;  %s46_s15 = int_to_ptr.hbm [resolvable:$true] %s45_s15 }
   0x7   :  { %26 = dma.hbm_to_vmem [thread:$0]  %s22_s8, 128, %s24_s12, [#allocation4]  }
   0x8   :  { %s55_s17 = sshll.u32 %s558_s3, 4  ;;  %s487_s18 = smov [#allocation7]   ;;  %s56_s17 = int_to_ptr.hbm [resolvable:$true] %s55_s17 }
   0x9   :  { %s47_s19 = sshll.u32 %s487_s18, 4  ;;  %s488_s0 = smov [#allocation8]   ;;  %s48_s19 = int_to_ptr.vmem [resolvable:$true] %s47_s19 }
   0xa   :  { %50 = dma.hbm_to_vmem [thread:$0]  %s46_s15, 16, %s48_s19, [#allocation6]  }
   0xb   :  { %s57_s20 = sshll.u32 %s488_s0, 4  ;;  %s489_s21 = smov 128   ;;  %s58_s20 = int_to_ptr.vmem [resolvable:$true] %s57_s20 }
   0xc   :  { %s490_s22 = smov 8  }
   0xd   :  { %63 = dma.hbm_to_vmem [thread:$0]  %s56_s17, 2048, %s58_s20, [#allocation9], %s489_s21, %s489_s21, %s490_s22  }
   0xe   :  { %477 = dma.done.wait [#allocation4], 128  }
   0xf   :  { %478 = vsyncadd [#allocation4], 4294967168 }
  0x10   :  { %479 = dma.done.wait [#allocation6], 272  }
  0x11   :  { %480 = vsyncadd [#allocation6], 4294967024 }
  0x12   :  { %481 = dma.done.wait [#allocation9], 2048  }
  0x13   :  { %482 = vsyncadd [#allocation9], 4294965248  ;;  %v355_v0 = vld [vmem:[#allocation5 + $0x8] sm:$0xff]  ;;  %v354_v1 = vld [vmem:[#allocation5] sm:$0xff]  ;;  %vm109_vm0 = vcmask 261120   ;;  %vm272_vm1 = vcmask 7168  }
  0x14   :  { %v87_v2 = vld [vmem:[#allocation3] sm:$0xff]  ;;  %v348_v3 = vld [vmem:[#allocation8 + $0x70] sm:$0xf]  ;;  %v371_v4 = vld [vmem:[#allocation8 + $0x74] sm:$0xf0]  ;;  %119 = vmatpush.bf16.msra.mxu0 %v355_v0 }
  0x15   :  { %v370_v5 = vld [vmem:[#allocation8 + $0x74] sm:$0xf]  ;;  %v349_v6 = vor.u32 %v371_v4, %v348_v3  ;;  %v350_v7 = vld [vmem:[#allocation8 + $0x78] sm:$0xf0]  ;;  %v340_v8 = vld [vmem:[#allocation8 + $0x60] sm:$0xf]  ;;  %v88_v14 = vpack.c.bf16 %v87_v2, %v87_v2 }
  0x16   :  { %v369_v9 = vld [vmem:[#allocation8 + $0x64] sm:$0xf0]  ;;  %v353_v10 = vor.u32 %v370_v5, %v350_v7  ;;  %v368_v11 = vld [vmem:[#allocation8 + $0x64] sm:$0xf]  ;;  %v342_v12 = vld [vmem:[#allocation8 + $0x68] sm:$0xf0] }
  0x17   :  { %230 = vmatpush.bf16.msra.mxu1 %v349_v6  ;;  %v341_v13 = vor.u32 %v369_v9, %v340_v8  ;;  %v345_v15 = vor.u32 %v368_v11, %v342_v12  ;;  %v332_v16 = vld [vmem:[#allocation8 + $0x50] sm:$0xf]  ;;  %v367_v17 = vld [vmem:[#allocation8 + $0x54] sm:$0xf0]  ;;  %v366_v18 = vld [vmem:[#allocation8 + $0x54] sm:$0xf]  ;;  %v270_v11 = vstv %s561_s6 }
  0x18   :  { %243 = vmatpush.bf16.msra.mxu2 %v353_v10  ;;  %120 = vmatpush.bf16.msra.mxu0 %v354_v1  ;;  %v334_v19 = vld [vmem:[#allocation8 + $0x58] sm:$0xf0]  ;;  %v333_v20 = vor.u32 %v367_v17, %v332_v16  ;;  %v324_v22 = vld [vmem:[#allocation8 + $0x40] sm:$0xf]  ;;  %v365_v23 = vld [vmem:[#allocation8 + $0x44] sm:$0xf0] }
  0x19   :  { %v337_v21 = vor.u32 %v366_v18, %v334_v19  ;;  %v364_v24 = vld [vmem:[#allocation8 + $0x44] sm:$0xf]  ;;  %v326_v25 = vld [vmem:[#allocation8 + $0x48] sm:$0xf0]  ;;  %v325_v26 = vor.u32 %v365_v23, %v324_v22  ;;  %v316_v28 = vld [vmem:[#allocation8 + $0x30] sm:$0xf] }
  0x1a   :  { %v329_v27 = vor.u32 %v364_v24, %v326_v25  ;;  %v363_v29 = vld [vmem:[#allocation8 + $0x34] sm:$0xf0]  ;;  %v362_v30 = vld [vmem:[#allocation8 + $0x34] sm:$0xf]  ;;  %v318_v31 = vld [vmem:[#allocation8 + $0x38] sm:$0xf0] }
  0x1b   :  { %231 = vmatpush.bf16.msra.mxu1 %v341_v13  ;;  %289 = vmatmul.msk.bf16.vlgmr.msra.gmra.mxu0 %vm109_vm0, %v88_v14  ;;  %v317_v32 = vor.u32 %v363_v29, %v316_v28  ;;  %v321_v33 = vor.u32 %v362_v30, %v318_v31  ;;  %v308_v34 = vld [vmem:[#allocation8 + $0x20] sm:$0xf]  ;;  %v361_v35 = vld [vmem:[#allocation8 + $0x24] sm:$0xf0]  ;;  %v360_v36 = vld [vmem:[#allocation8 + $0x24] sm:$0xf] }
  0x1c   :  { %244 = vmatpush.bf16.msra.mxu2 %v345_v15  ;;  %v310_v37 = vld [vmem:[#allocation8 + $0x28] sm:$0xf0]  ;;  %v309_v38 = vor.u32 %v361_v35, %v308_v34  ;;  %v300_v40 = vld [vmem:[#allocation8 + $0x10] sm:$0xf]  ;;  %v359_v41 = vld [vmem:[#allocation8 + $0x14] sm:$0xf0] }
  0x1d   :  { %v313_v39 = vor.u32 %v360_v36, %v310_v37  ;;  %v358_v42 = vld [vmem:[#allocation8 + $0x14] sm:$0xf]  ;;  %v301_v43 = vor.u32 %v359_v41, %v300_v40  ;;  %v302_v44 = vld [vmem:[#allocation8 + $0x18] sm:$0xf0]  ;;  %v292_v46 = vld [vmem:[#allocation8] sm:$0xf] }
  0x1e   :  { %v305_v45 = vor.u32 %v358_v42, %v302_v44  ;;  %v357_v47 = vld [vmem:[#allocation8 + $0x4] sm:$0xf0]  ;;  %v356_v48 = vld [vmem:[#allocation8 + $0x4] sm:$0xf]  ;;  %v294_v50 = vld [vmem:[#allocation8 + $0x8] sm:$0xf0] }
  0x1f   :  { %232 = vmatpush.bf16.msra.mxu1 %v333_v20  ;;  %v293_v49 = vor.u32 %v357_v47, %v292_v46  ;;  %v297_v51 = vor.u32 %v356_v48, %v294_v50  ;;  %v380_v52 = vld [vmem:[#allocation7] ss:$0 sm:$0xff]  ;;  %v144_v58 = vld [vmem:[%s559_s4] sm:$0x3] }
  0x20   :  { %245 = vmatpush.bf16.msra.mxu2 %v337_v21  ;;  %v146_v59 = vperm.slane %v144_v58, 0  ;;  %v147_v62 = vperm.slane %v144_v58, 1  ;;  %v258_v63 = vld [vmem:[%s560_s5] sm:$0x3] }
  0x21   :  { %v260_v3 = vperm.slane %v258_v63, 0  ;;  %v261_v4 = vperm.slane %v258_v63, 1 }
  0x23   :  { %233 = vmatpush.bf16.msra.mxu1 %v325_v26 }
  0x24   :  { %246 = vmatpush.bf16.msra.mxu2 %v329_v27 }
  0x27   :  { %234 = vmatpush.bf16.msra.mxu1 %v317_v32 }
  0x28   :  { %247 = vmatpush.bf16.msra.mxu2 %v321_v33 }
  0x2b   :  { %235 = vmatpush.bf16.msra.mxu1 %v309_v38 }
  0x2c   :  { %248 = vmatpush.bf16.msra.mxu2 %v313_v39 }
  0x2f   :  { %236 = vmatpush.bf16.msra.mxu1 %v301_v43 }
  0x30   :  { %249 = vmatpush.bf16.msra.mxu2 %v305_v45 }
  0x33   :  { %237 = vmatpush.bf16.msra.mxu1 %v293_v49 }
  0x34   :  { %250 = vmatpush.bf16.msra.mxu2 %v297_v51 }
  0x98   :  { %v122_v53 = vpop.f32.mrf.mxu0 }
  0x99   :  { %v123_v54 = vadd.f32 %v380_v52, %v122_v53 }
  0x9b   :  { %v126_v55 = vmax.f32 %v123_v54, 0.0 }
  0x9d   :  { %v127_v56 = vpack.c.bf16 %v126_v55, %v126_v55 }
  0x9f   :  { %238 = vmatmul.bf16.vlgmr.msra.gmra.mxu1 %v127_v56  ;;  %251 = vmatmul.bf16.vlgmr.msra.gmra.mxu2 %v127_v56 }
  0xa0   :  { %v124_v57 = vpop.f32.mrf.mxu0 }
 0x11c   :  { %v239_v60 = vpop.f32.mrf.mxu1 }
 0x11d   :  { %v240_v61 = vadd.f32 %v239_v60, %v146_v59 }
 0x11f   :  { %v256_v1 = vmax.f32 %v240_v61, 0.0 }
 0x121   :  { %v264_v7 = vmul.f32 %v260_v3, %v256_v1 }
 0x122   :  { %v252_v0 = vpop.f32.mrf.mxu2 }
 0x123   :  { %v253_v2 = vadd.f32 %v252_v0, %v147_v62 }
 0x124   :  { %v241_v5 = vpop.f32.mrf.mxu1 }
 0x125   :  { %v257_v6 = vmax.f32 %v253_v2, 0.0 }
 0x127   :  { %v265_v8 = vmul.f32 %v261_v4, %v257_v6 }
 0x129   :  { %v266_v9 = vadd.f32 %v265_v8, %v264_v7 }
 0x12a   :  { %v254_v10 = vpop.f32.mrf.mxu2 }
 0x12b   :  { %267 = vadd.xlane.f32.xlu0 %v266_v9 }
 0x19e   :  { %v268_v12 = vpop.xlane.xlu0 %267 }
 0x19f   :  { %v271_v13 = vadd.f32 %v270_v11, %v268_v12 }
 0x1a1   :  { %273 = vst.msk [vmem:[%s562_s7] sm:$0xff] %vm272_vm1, %v271_v13 }
 0x1a2   :  { %278 = vsyncpa [#allocation4], 1 }
 0x1a3   :  { %279 = vsyncpa [#allocation6], 1 }
 0x1a4   :  { %280 = vsyncpa [#allocation9], 1 }

</bundles_post_ra>
